<compile_context>
chip_gen: v7x
topology: tpu7x:2x2x1
jax: 0.10.0
libtpu: 0.0.40
codegen_flags: <defaults>
</compile_context>

<pallas_src>
import jax
import jax.numpy as jnp
from jax.experimental import pallas as pl
from jax.experimental.pallas import tpu as pltpu


def _round_up(n: int, m: int) -> int:
    return ((n + m - 1) // m) * m


def net_kernel(x_ref, w1_ref, w2_ref, w3_ref, bias_ref, o_ref):
    # x_ref:   (2, TILE_B)   activations, batch on lanes
    # w1_ref:  (10, 2)       fc1 weight (out, in)
    # w2_ref:  (50, 10)      fc2 weight (out, in)
    # w3_ref:  (8, 50)       fc3 weight, output rows zero-padded 4 -> 8
    # bias_ref:(8, TILE_B)   0 for real classes, -1e30 for padded sublanes
    # o_ref:   (8, TILE_B)   softmax probabilities (padded rows are 0)
    x = x_ref[...]
    w1 = w1_ref[...]

    # fc1 + ReLU on the VPU: K=2, two broadcast-multiply-adds beat an MXU
    # push/pop for this tiny contraction.
    h1 = w1[:, 0:1] * x[0:1, :] + w1[:, 1:2] * x[1:2, :]      # (10, TILE_B)
    h1 = jnp.maximum(h1, 0.0)

    # fc2 + ReLU (MXU): (50, 10) @ (10, TILE_B)
    h2 = jnp.dot(w2_ref[...], h1, preferred_element_type=jnp.float32)
    h2 = jnp.maximum(h2, 0.0)                                  # (50, TILE_B)

    # fc3 (MXU) into an 8-sublane slab: (8, 50) @ (50, TILE_B)
    logits = jnp.dot(w3_ref[...], h2, preferred_element_type=jnp.float32)
    logits = logits + bias_ref[...]        # padded rows -> -1e30 (single vadd)

    # Numerically stable softmax over the class axis (axis 0 here).
    m = jnp.max(logits, axis=0, keepdims=True)                 # (1, TILE_B)
    e = jnp.exp(logits - m)                                    # padded rows -> 0
    denom = jnp.sum(e, axis=0, keepdims=True)                  # (1, TILE_B)
    probs = e * pl.reciprocal(denom, approx=False)             # exact normalize

    o_ref[...] = probs.astype(o_ref.dtype)                     # lane-dense store


def init_net_forward(w1, w2, w3, *, max_tile_b: int = 2048):
    """Build a jitted forward(x) for PyTorch-shaped weights.

    w1: (10, 2), w2: (50, 10), w3: (4, 50)  -- nn.Linear (out_features, in_features).
    Returns a callable x:(B, 2) -> probs:(B, 4).
    """
    in_dim = w1.shape[1]
    out_dim = w3.shape[0]
    out_pad = _round_up(max(out_dim, 8), 8)        # 4 -> 8 sublanes

    # Pad fc3 output rows to a full sublane tile ONCE at init (not per call).
    w3_pad = jnp.pad(w3.astype(jnp.float32), ((0, out_pad - out_dim), (0, 0)))
    w1f = w1.astype(jnp.float32)
    w2f = w2.astype(jnp.float32)

    @jax.jit
    def forward(x):
        B = x.shape[0]
        # Minimize grid steps: one step whenever the (128-aligned) batch fits.
        tile_b = min(max_tile_b, _round_up(B, 128))
        b_pad = _round_up(B, tile_b)
        n_tiles = b_pad // tile_b

        # Batch-on-lanes layout; pad batch to the tile.  Fused under jit.
        x_t = x.astype(jnp.float32).T                          # (2, B)
        if b_pad != B:
            x_t = jnp.pad(x_t, ((0, 0), (0, b_pad - B)))

        # Additive class mask: data-independent, constant-folded by XLA.
        bias = jnp.full((out_pad, tile_b), -1e30, jnp.float32)
        bias = bias.at[:out_dim, :].set(0.0)

        out_t = pl.pallas_call(
            net_kernel,
            out_shape=jax.ShapeDtypeStruct((out_pad, b_pad), jnp.float32),
            grid=(n_tiles,),
            in_specs=[
                # Activations: tiled over the batch (lanes), double-buffered.
                pl.BlockSpec((in_dim, tile_b), lambda i: (0, i)),
                # Weights + mask: constant index_map -> VMEM-resident across steps.
                pl.BlockSpec(w1f.shape, lambda i: (0, 0)),
                pl.BlockSpec(w2f.shape, lambda i: (0, 0)),
                pl.BlockSpec(w3_pad.shape, lambda i: (0, 0)),
                pl.BlockSpec((out_pad, tile_b), lambda i: (0, 0)),
            ],
            out_specs=pl.BlockSpec((out_pad, tile_b), lambda i: (0, i)),
            compiler_params=pltpu.CompilerParams(
                # No-op at grid=(1,); shards the batch across v7x cores when
                # B is large enough to need multiple tiles.
                dimension_semantics=("parallel",),
            ),
        )(x_t, w1f, w2f, w3_pad, bias)

        # Transpose back and drop padded rows/batch; fuses with the call under jit.
        return out_t[:out_dim, :B].T                           # (B, out_dim)

    return forward


def reference_forward(x, w1, w2, w3):
    h1 = jnp.maximum(x @ w1.T, 0.0)
    h2 = jnp.maximum(h1 @ w2.T, 0.0)
    logits = h2 @ w3.T
    return jax.nn.softmax(logits, axis=1)


if __name__ == "__main__":
    key = jax.random.PRNGKey(0)
    k_x, k1, k2, k3 = jax.random.split(key, 4)

    # Batch deliberately NOT a multiple of 128 to exercise the pad path;
    # rounds up to a single 256-wide tile -> grid=(1,).
    B = 200
    # PyTorch nn.Linear weight shapes (out_features, in_features), no bias.
    w1 = jax.random.normal(k1, (10, 2), dtype=jnp.float32) * 0.5
    w2 = jax.random.normal(k2, (50, 10), dtype=jnp.float32) * 0.3
    w3 = jax.random.normal(k3, (4, 50), dtype=jnp.float32) * 0.2

    x = jax.random.normal(k_x, (B, 2), dtype=jnp.float32)

    forward = init_net_forward(w1, w2, w3)
    out = forward(x)
    out = jax.block_until_ready(out)

    ref = reference_forward(x, w1, w2, w3)
    assert out.shape == (B, 4)
    assert jnp.allclose(out, ref, atol=1e-5, rtol=1e-5), "mismatch vs reference"
    assert jnp.allclose(jnp.sum(out, axis=1), jnp.ones((B,)), atol=1e-5)

    print("KERNEL_OK")
</pallas_src>

<mosaic_0001>
module attributes {stable_mosaic.version = 11 : i64} {
  func.func @net_kernel(%arg0: i32, %arg1: memref<2x256xf32, #tpu.memory_space<vmem>>, %arg2: memref<10x2xf32, #tpu.memory_space<vmem>>, %arg3: memref<50x10xf32, #tpu.memory_space<vmem>>, %arg4: memref<8x50xf32, #tpu.memory_space<vmem>>, %arg5: memref<8x256xf32, #tpu.memory_space<vmem>>, %arg6: memref<8x256xf32, #tpu.memory_space<vmem>>) attributes {dimension_semantics = [#tpu.dimension_semantics<parallel>], iteration_bounds = array<i64: 1>, scalar_prefetch = 0 : i64, scratch_operands = 0 : i64, tpu.core_type = #tpu.core_type<tc>, window_params = [{transform_indices = @transform_0, window_bounds = array<i64: 2, 256>}, {pipeline_mode = #tpu.pipeline_mode<synchronous>, transform_indices = @transform_1, window_bounds = array<i64: 10, 2>}, {pipeline_mode = #tpu.pipeline_mode<synchronous>, transform_indices = @transform_2, window_bounds = array<i64: 50, 10>}, {pipeline_mode = #tpu.pipeline_mode<synchronous>, transform_indices = @transform_3, window_bounds = array<i64: 8, 50>}, {pipeline_mode = #tpu.pipeline_mode<synchronous>, transform_indices = @transform_4, window_bounds = array<i64: 8, 256>}, {transform_indices = @transform_5, window_bounds = array<i64: 8, 256>}]} {
    %c0 = arith.constant 0 : index
    %c0_0 = arith.constant 0 : index
    %0 = vector.load %arg1[%c0, %c0_0] : memref<2x256xf32, #tpu.memory_space<vmem>>, vector<2x256xf32>
    %c0_1 = arith.constant 0 : index
    %c0_2 = arith.constant 0 : index
    %1 = vector.load %arg2[%c0_1, %c0_2] : memref<10x2xf32, #tpu.memory_space<vmem>>, vector<10x2xf32>
    %2 = vector.extract_strided_slice %1 {offsets = [0, 0], sizes = [10, 1], strides = [1, 1]} : vector<10x2xf32> to vector<10x1xf32>
    %3 = vector.extract_strided_slice %0 {offsets = [0, 0], sizes = [1, 256], strides = [1, 1]} : vector<2x256xf32> to vector<1x256xf32>
    %4 = vector.broadcast %2 : vector<10x1xf32> to vector<10x256xf32>
    %5 = vector.broadcast %3 : vector<1x256xf32> to vector<10x256xf32>
    %6 = arith.mulf %4, %5 : vector<10x256xf32>
    %7 = vector.extract_strided_slice %1 {offsets = [0, 1], sizes = [10, 1], strides = [1, 1]} : vector<10x2xf32> to vector<10x1xf32>
    %8 = vector.extract_strided_slice %0 {offsets = [1, 0], sizes = [1, 256], strides = [1, 1]} : vector<2x256xf32> to vector<1x256xf32>
    %9 = vector.broadcast %7 : vector<10x1xf32> to vector<10x256xf32>
    %10 = vector.broadcast %8 : vector<1x256xf32> to vector<10x256xf32>
    %11 = arith.mulf %9, %10 : vector<10x256xf32>
    %12 = arith.addf %6, %11 : vector<10x256xf32>
    %cst = arith.constant 0.000000e+00 : f32
    %13 = vector.broadcast %cst : f32 to vector<10x256xf32>
    %14 = arith.maximumf %12, %13 : vector<10x256xf32>
    %c0_3 = arith.constant 0 : index
    %c0_4 = arith.constant 0 : index
    %15 = vector.load %arg3[%c0_3, %c0_4] : memref<50x10xf32, #tpu.memory_space<vmem>>, vector<50x10xf32>
    %cst_5 = arith.constant dense<0.000000e+00> : vector<50x256xf32>
    %16 = tpu.matmul %15, %14, %cst_5 {dimension_numbers = #tpu.dot_dimension_numbers<[1], [0], [0], [1], [0, 0, 1, 1], [], []>} : vector<50x10xf32>, vector<10x256xf32>, vector<50x256xf32> -> vector<50x256xf32>
    %cst_6 = arith.constant 0.000000e+00 : f32
    %17 = vector.broadcast %cst_6 : f32 to vector<50x256xf32>
    %18 = arith.maximumf %16, %17 : vector<50x256xf32>
    %c0_7 = arith.constant 0 : index
    %c0_8 = arith.constant 0 : index
    %19 = vector.load %arg4[%c0_7, %c0_8] : memref<8x50xf32, #tpu.memory_space<vmem>>, vector<8x50xf32>
    %cst_9 = arith.constant dense<0.000000e+00> : vector<8x256xf32>
    %20 = tpu.matmul %19, %18, %cst_9 {dimension_numbers = #tpu.dot_dimension_numbers<[1], [0], [0], [1], [0, 0, 1, 1], [], []>} : vector<8x50xf32>, vector<50x256xf32>, vector<8x256xf32> -> vector<8x256xf32>
    %c0_10 = arith.constant 0 : index
    %c0_11 = arith.constant 0 : index
    %21 = vector.load %arg5[%c0_10, %c0_11] : memref<8x256xf32, #tpu.memory_space<vmem>>, vector<8x256xf32>
    %22 = arith.addf %20, %21 : vector<8x256xf32>
    %cst_12 = arith.constant dense<0xFF800000> : vector<256xf32>
    %23 = vector.multi_reduction <maximumf>, %22, %cst_12 [0] : vector<8x256xf32> to vector<256xf32>
    %24 = vector.shape_cast %23 : vector<256xf32> to vector<1x256xf32>
    %25 = vector.broadcast %24 : vector<1x256xf32> to vector<8x256xf32>
    %26 = arith.subf %22, %25 : vector<8x256xf32>
    %27 = math.exp %26 : vector<8x256xf32>
    %cst_13 = arith.constant dense<0.000000e+00> : vector<256xf32>
    %28 = vector.multi_reduction <add>, %27, %cst_13 [0] : vector<8x256xf32> to vector<256xf32>
    %29 = vector.shape_cast %28 : vector<256xf32> to vector<1x256xf32>
    %30 = tpu.reciprocal %29 : vector<1x256xf32> -> vector<1x256xf32>
    %31 = vector.broadcast %30 : vector<1x256xf32> to vector<8x256xf32>
    %32 = arith.mulf %27, %31 : vector<8x256xf32>
    %c0_14 = arith.constant 0 : index
    %c0_15 = arith.constant 0 : index
    %33 = vector.load %arg6[%c0_14, %c0_15] : memref<8x256xf32, #tpu.memory_space<vmem>>, vector<8x256xf32>
    tpu.vector_store %arg6[%c0_14, %c0_15], %32 {strides = array<i32>} : memref<8x256xf32, #tpu.memory_space<vmem>>, vector<8x256xf32>,
    return
  }
  func.func @transform_0(%arg0: i32) -> (i32, i32) {
    %c0_i32 = arith.constant 0 : i32
    %c0_i32_0 = arith.constant 0 : i32
    return %c0_i32, %arg0 : i32, i32
  }
  func.func @transform_1(%arg0: i32) -> (i32, i32) {
    %c0_i32 = arith.constant 0 : i32
    %c0_i32_0 = arith.constant 0 : i32
    %c0_i32_1 = arith.constant 0 : i32
    return %c0_i32, %c0_i32_0 : i32, i32
  }
  func.func @transform_2(%arg0: i32) -> (i32, i32) {
    %c0_i32 = arith.constant 0 : i32
    %c0_i32_0 = arith.constant 0 : i32
    %c0_i32_1 = arith.constant 0 : i32
    return %c0_i32, %c0_i32_0 : i32, i32
  }
  func.func @transform_3(%arg0: i32) -> (i32, i32) {
    %c0_i32 = arith.constant 0 : i32
    %c0_i32_0 = arith.constant 0 : i32
    %c0_i32_1 = arith.constant 0 : i32
    return %c0_i32, %c0_i32_0 : i32, i32
  }
  func.func @transform_4(%arg0: i32) -> (i32, i32) {
    %c0_i32 = arith.constant 0 : i32
    %c0_i32_0 = arith.constant 0 : i32
    %c0_i32_1 = arith.constant 0 : i32
    return %c0_i32, %c0_i32_0 : i32, i32
  }
  func.func @transform_5(%arg0: i32) -> (i32, i32) {
    %c0_i32 = arith.constant 0 : i32
    %c0_i32_0 = arith.constant 0 : i32
    return %c0_i32, %arg0 : i32, i32
  }
}

</mosaic_0001>

<bundles_post_ra>
// kernel: forward.1
= control target key start
LH: loop header
LB: loop body
LE: loop exit
PB: predicated region body
PF: predicated region fallthrough
CT: control target
= control target key end

     0   :  { %10 = vsyncpa [#allocation3], 0  ;;  %s600_s0 = inlined_call_operand.vmem [shape: f32[2,256], index: 0, kind: input, shape index: {}]   ;;  %s601_s1 = inlined_call_operand.hbm [shape: f32[10,2], index: 1, kind: input, shape index: {}]   ;;  %s602_s2 = inlined_call_operand.hbm [shape: f32[50,10], index: 2, kind: input, shape index: {}]   ;;  %s603_s3 = inlined_call_operand.vmem [shape: f32[8,50], index: 3, kind: input, shape index: {}]   ;;  %s604_s4 = inlined_call_operand.vmem [shape: f32[8,256], index: 4, kind: input, shape index: {}]   ;;  %s605_s5 = inlined_call_operand.vmem [shape: f32[8,256], index: 5, kind: output, shape index: {}]  }
   0x1   :  { %11 = vsyncpa [#allocation5], 0  ;;  %s502_s18 = smov [#allocation2]   ;;  %s454_s22 = scalar_lea.hbm %s601_s1, 256 }
   0x2   :  { %s19_s19 = sshll.u32 %s502_s18, 4  ;;  %p455_p0 = scmp.ne.s32.totalorder %s601_s1, %s454_s22  ;;  %s20_s19 = int_to_ptr.vmem [resolvable:$true] %s19_s19 }
   0x3   :  { %p458_p1 = scmp.lt.u32.totalorder %s454_s22, %s601_s1 }
   0x5   :  { %p460_p2 = pnand %p458_p1, %p455_p0 }
   0x7   :  { %463 = shalt.err (!%p460_p2)
}
   0x8   :  { %s464_s27 = scalar_lea.vmem %s20_s19, 256  ;;  %p469_p4 = scmp.lt.s32.totalorder %s20_s19, %s20_s19 }
   0x9   :  { %p465_p3 = scmp.ne.s32.totalorder %s20_s19, %s464_s27  ;;  %p470_p5 = scmp.lt.s32.totalorder %s464_s27, %s464_s27 }
   0xb   :  { %p471_p6 = por %p470_p5, %p469_p4 }
   0xd   :  { %p472_p7 = pnand %p471_p6, %p465_p3 }
   0xf   :  { %475 = shalt.err (!%p472_p7)
}
  0x10   :  { %s503_s28 = smov 128   ;;  %s504_s29 = smov 8  }
  0x11   :  { %25 = dma.hbm_to_vmem [thread:$0]  %s601_s1, 256, %s20_s19, [#allocation3], %s503_s28, %s503_s28, %s504_s29  }
  0x12   :  { %s505_s7 = smov [#allocation4]   ;;  %s476_s11 = scalar_lea.hbm %s602_s2, 896 }
  0x13   :  { %s31_s8 = sshll.u32 %s505_s7, 4  ;;  %p477_p8 = scmp.ne.s32.totalorder %s602_s2, %s476_s11  ;;  %s32_s8 = int_to_ptr.vmem [resolvable:$true] %s31_s8 }
  0x14   :  { %p480_p9 = scmp.lt.u32.totalorder %s476_s11, %s602_s2 }
  0x16   :  { %p482_p10 = pnand %p480_p9, %p477_p8 }
  0x18   :  { %485 = shalt.err (!%p482_p10)
}
  0x19   :  { %s486_s16 = scalar_lea.vmem %s32_s8, 896  ;;  %p491_p12 = scmp.lt.s32.totalorder %s32_s8, %s32_s8 }
  0x1a   :  { %p487_p11 = scmp.ne.s32.totalorder %s32_s8, %s486_s16  ;;  %p492_p13 = scmp.lt.s32.totalorder %s486_s16, %s486_s16 }
  0x1c   :  { %p493_p0 = por %p492_p13, %p491_p12 }
  0x1e   :  { %p494_p1 = pnand %p493_p0, %p487_p11 }
  0x20   :  { %497 = shalt.err (!%p494_p1)
}
  0x21   :  { %37 = dma.hbm_to_vmem [thread:$0]  %s602_s2, 896, %s32_s8, [#allocation5], %s503_s28, %s503_s28, %s504_s29  }
  0x22   :  { %498 = dma.done.wait [#allocation3], 256  }
  0x23   :  { %499 = vsyncadd [#allocation3], 4294967040 }
  0x24   :  { %500 = dma.done.wait [#allocation5], 896  }
  0x25   :  { %501 = vsyncadd [#allocation5], 4294966400  ;;  %v506_v0 = vmov 1   ;;  %v507_v1 = vmov 0   ;;  %v49_v2 = vld [vmem:[#allocation2] sm:$0xff]  ;;  %v508_v4 = vmov 0.0   ;;  %v62_v5 = vlaneseq }
  0x26   :  { %444 = vset.pattern.permute.xlu1 %v506_v0  ;;  %443 = vset.pattern.permute.xlu0 %v507_v1  ;;  %v50_v3 = vld [vmem:[#allocation2 + $0x8] sm:$0x3]  ;;  %v48_v10 = vld [vmem:[%s600_s0] sm:$0xf]  ;;  %vm151_vm0 = vcmask 1041408   ;;  %vm509_vm1 = vmmov 1  }
  0x27   :  { %85 = vperm.xlu1 %444, %v49_v2   ;;  %53 = vperm.xlu0 %443, %v49_v2   ;;  %v63_v6 = vshrl.u32 %v62_v5, 7  ;;  %vm418_vm2 = vmpackc.low %vm151_vm0, %vm509_vm1  ;;  %v122_v42 = vld [vmem:[#allocation4] sm:$0xff]  ;;  %vm129_vm3 = vcmask 80896   ;;  %v123_v43 = vld [vmem:[#allocation4 + $0x8] sm:$0xff]  ;;  %vm282_vm4 = vcmask 408576  }
  0x28   :  { %222 = vmatprep.mubr.f32.mxu0 %v508_v4  ;;  %356 = vmatprep.mubr.f32.mxu1 %v508_v4  ;;  %v124_v44 = vld [vmem:[#allocation4 + $0x10] sm:$0xff]  ;;  %v125_v45 = vld [vmem:[#allocation4 + $0x18] sm:$0xff]  ;;  %v126_v46 = vld [vmem:[#allocation4 + $0x20] sm:$0xff] }
  0x29   :  { %v94_v7 = vsub.s32 1, %v63_v6  ;;  %v64_v8 = vsub.s32 0, %v63_v6  ;;  %v98_v9 = vsub.s32 3, %v63_v6  ;;  %v68_v11 = vsub.s32 2, %v63_v6  ;;  %v127_v47 = vld [vmem:[#allocation4 + $0x28] sm:$0xff] }
  0x2a   :  { %v128_v48 = vld [vmem:[#allocation4 + $0x30] sm:$0x3] }
  0x2b   :  { %89 = vperm.xlu1 %444, %v50_v3   ;;  %58 = vperm.xlu0 %443, %v50_v3   ;;  %v95_v12 = vrot.slane %v48_v10, %v94_v7  ;;  %v65_v13 = vrot.slane %v48_v10, %v64_v8  ;;  %v99_v14 = vrot.slane %v48_v10, %v98_v9 }
  0x2c   :  { %v69_v15 = vrot.slane %v48_v10, %v68_v11 }
  0x2d   :  { %v105_v16 = vrot.slane %v95_v12, %v94_v7  ;;  %v75_v17 = vrot.slane %v65_v13, %v64_v8  ;;  %v109_v18 = vrot.slane %v99_v14, %v94_v7 }
  0x2e   :  { %v79_v19 = vrot.slane %v69_v15, %v64_v8 }
  0x2f   :  { %445 = vset.pattern.permute.xlu0 %v506_v0 }
  0xa6   :  { %v86_v20 = vpop.permute.xlu1 %85  ;;  %v54_v21 = vpop.permute.xlu0 %53 }
  0xa7   :  { %v110_v22 = vmul.f32 %v105_v16, %v86_v20  ;;  %v80_v23 = vmul.f32 %v75_v17, %v54_v21  ;;  %v111_v24 = vmul.f32 %v109_v18, %v86_v20  ;;  %v81_v25 = vmul.f32 %v79_v19, %v54_v21  ;;  %v280_v20 = vld [vmem:[%s604_s4] sm:$0xff]  ;;  %v281_v21 = vld [vmem:[%s604_s4 + $0x8] sm:$0xff] }
  0xa9   :  { %v114_v28 = vadd.f32 %v110_v22, %v80_v23  ;;  %v115_v32 = vadd.f32 %v111_v24, %v81_v25 }
  0xaa   :  { %v90_v26 = vpop.permute.xlu1 %89  ;;  %v59_v27 = vpop.permute.xlu0 %58 }
  0xab   :  { %v112_v29 = vmul.f32 %v105_v16, %v90_v26  ;;  %v113_v30 = vmul.f32 %v109_v18, %v90_v26  ;;  %v82_v31 = vmul.f32 %v75_v17, %v59_v27  ;;  %v83_v33 = vmul.f32 %v79_v19, %v59_v27  ;;  %v279_v19 = vld [vmem:[%s603_s3] sm:$0xff] }
  0xac   :  { %v118_v36 = vmax.f32 %v114_v28, 0.0  ;;  %v119_v39 = vmax.f32 %v115_v32, 0.0 }
  0xad   :  { %v116_v34 = vadd.f32 %v112_v29, %v82_v31  ;;  %v117_v35 = vadd.f32 %v113_v30, %v83_v33 }
  0xaf   :  { %v120_v37 = vmax.f32 %v116_v34, 0.0  ;;  %v121_v38 = vmax.f32 %v117_v35, 0.0 }
  0xb1   :  { %v420_v40 = vpack.c.bf16 %v120_v37, %v118_v36  ;;  %v417_v41 = vpack.c.bf16 %v121_v38, %v119_v39 }
  0xb3   :  { %419 = vmatprep.subr.msk.bf16.mxu0 %vm418_vm2, %v417_v41 }
  0xb4   :  { %422 = vmatpush1.bf16.msk.msra.mxu0 %vm418_vm2, %v420_v40 }
  0xb7   :  { %407 = vmatmul.mubr.msk.f32.vlgmr.msra.gmra.mrb[0].mxu0 %vm129_vm3, %v122_v42 }
  0xb8   :  { %228 = vmatprep.mubr.f32.mxu0 %v508_v4 }
  0xbb   :  { %408 = vmatmul.mubr.msk.f32.gmra.mrb[2].mxu0 %vm129_vm3, %v123_v43 }
  0xbc   :  { %234 = vmatprep.mubr.f32.mxu0 %v508_v4 }
  0xbf   :  { %409 = vmatmul.mubr.msk.f32.gmra.mrb[4].mxu0 %vm129_vm3, %v124_v44 }
  0xc0   :  { %240 = vmatprep.mubr.f32.mxu0 %v508_v4 }
  0xc3   :  { %410 = vmatmul.mubr.msk.f32.gmra.mrb[6].mxu0 %vm129_vm3, %v125_v45 }
  0xc4   :  { %246 = vmatprep.mubr.f32.mxu0 %v508_v4 }
  0xc7   :  { %411 = vmatmul.mubr.msk.f32.gmra.mrb[8].mxu0 %vm129_vm3, %v126_v46 }
  0xc8   :  { %252 = vmatprep.mubr.f32.mxu0 %v508_v4 }
  0xcb   :  { %412 = vmatmul.mubr.msk.f32.gmra.mrb[10].mxu0 %vm129_vm3, %v127_v47 }
  0xcc   :  { %258 = vmatprep.mubr.f32.mxu0 %v508_v4 }
  0xcf   :  { %413 = vmatmul.mubr.msk.f32.gmra.mrb[12].mxu0 %vm129_vm3, %v128_v48 }
 0x18a   :  { %v224_v49 = vpop.f32.mrb[0].mxu0 }
 0x18b   :  { %v226_v50 = vpop.f32.mrb[1].mxu0  ;;  %v265_v52 = vmax.f32 %v224_v49, 0.0 }
 0x18c   :  { %v266_v55 = vmax.f32 %v226_v50, 0.0 }
 0x18e   :  { %v230_v51 = vpop.f32.mrb[2].mxu0 }
 0x18f   :  { %v267_v53 = vmax.f32 %v230_v51, 0.0  ;;  %v232_v54 = vpop.f32.mrb[3].mxu0 }
 0x190   :  { %v268_v56 = vmax.f32 %v232_v54, 0.0 }
 0x191   :  { %v425_v57 = vpack.c.bf16 %v267_v53, %v265_v52 }
 0x192   :  { %v236_v58 = vpop.f32.mrb[4].mxu0  ;;  %v423_v59 = vpack.c.bf16 %v268_v56, %v266_v55 }
 0x193   :  { %v238_v60 = vpop.f32.mrb[5].mxu0  ;;  %v269_v62 = vmax.f32 %v236_v58, 0.0 }
 0x194   :  { %424 = vmatprep.subr.bf16.mxu1 %v423_v59  ;;  %v270_v1 = vmax.f32 %v238_v60, 0.0 }
 0x195   :  { %426 = vmatpush1.bf16.msra.mxu1 %v425_v57 }
 0x196   :  { %v242_v61 = vpop.f32.mrb[6].mxu0 }
 0x197   :  { %v271_v63 = vmax.f32 %v242_v61, 0.0  ;;  %v244_v0 = vpop.f32.mrb[7].mxu0 }
 0x198   :  { %v272_v2 = vmax.f32 %v244_v0, 0.0 }
 0x199   :  { %v429_v3 = vpack.c.bf16 %v271_v63, %v269_v62 }
 0x19a   :  { %v427_v4 = vpack.c.bf16 %v272_v2, %v270_v1  ;;  %v248_v5 = vpop.f32.mrb[8].mxu0 }
 0x19b   :  { %v250_v6 = vpop.f32.mrb[9].mxu0  ;;  %v273_v8 = vmax.f32 %v248_v5, 0.0 }
 0x19c   :  { %428 = vmatprep.subr.bf16.mxu1 %v427_v4  ;;  %v274_v11 = vmax.f32 %v250_v6, 0.0 }
 0x19d   :  { %430 = vmatpush1.bf16.msra.mxu1 %v429_v3 }
 0x19e   :  { %v254_v7 = vpop.f32.mrb[10].mxu0 }
 0x19f   :  { %v275_v9 = vmax.f32 %v254_v7, 0.0  ;;  %v256_v10 = vpop.f32.mrb[11].mxu0 }
 0x1a0   :  { %v276_v12 = vmax.f32 %v256_v10, 0.0 }
 0x1a1   :  { %v433_v13 = vpack.c.bf16 %v275_v9, %v273_v8 }
 0x1a2   :  { %v431_v14 = vpack.c.bf16 %v276_v12, %v274_v11  ;;  %v260_v15 = vpop.f32.mrb[12].mxu0 }
 0x1a3   :  { %v262_v16 = vpop.f32.mrb[13].mxu0  ;;  %v277_v18 = vmax.f32 %v260_v15, 0.0 }
 0x1a4   :  { %v278_v17 = vmax.f32 %v262_v16, 0.0  ;;  %432 = vmatprep.subr.bf16.mxu1 %v431_v14 }
 0x1a5   :  { %434 = vmatpush1.bf16.msra.mxu1 %v433_v13 }
 0x1a6   :  { %414 = vmatprep.subr.msk.mxu1 %vm151_vm0, %v278_v17 }
 0x1a9   :  { %415 = vmatpush1.msk.msra.mxu1 %vm151_vm0, %v277_v18 }
 0x1aa   :  { %416 = vmatmul.mubr.msk.f32.vlgmr.msra.gmra.mrb[0].mxu1 %vm282_vm4, %v279_v19 }
 0x27d   :  { %v358_v22 = vpop.f32.mrb[0].mxu1 }
 0x27e   :  { %v359_v23 = vadd.f32 %v358_v22, %v280_v20  ;;  %v360_v24 = vpop.f32.mrb[1].mxu1 }
 0x27f   :  { %v361_v25 = vadd.f32 %v360_v24, %v281_v21 }
 0x280   :  { %v363_v26 = vrot.slane %v359_v23, 4 }
 0x281   :  { %v369_v27 = vrot.slane %v361_v25, 4 }
 0x282   :  { %v364_v28 = vmax.f32 %v359_v23, %v363_v26 }
 0x283   :  { %v370_v29 = vmax.f32 %v361_v25, %v369_v27 }
 0x284   :  { %v365_v30 = vrot.slane %v364_v28, 2 }
 0x285   :  { %v371_v31 = vrot.slane %v370_v29, 2 }
 0x286   :  { %v366_v32 = vmax.f32 %v364_v28, %v365_v30 }
 0x287   :  { %v372_v33 = vmax.f32 %v370_v29, %v371_v31 }
 0x288   :  { %v367_v34 = vrot.slane %v366_v32, 1 }
 0x289   :  { %v373_v35 = vrot.slane %v372_v33, 1 }
 0x28a   :  { %v368_v36 = vmax.f32 %v366_v32, %v367_v34 }
 0x28b   :  { %v374_v37 = vmax.f32 %v372_v33, %v373_v35 }
 0x28c   :  { %v375_v38 = vsub.f32 %v359_v23, %v368_v36 }
 0x28d   :  { %v376_v39 = vsub.f32 %v361_v25, %v374_v37 }
 0x28e   :  { %v377_v40 = vmul.f32 1.442695, %v375_v38 }
 0x28f   :  { %v379_v41 = vmul.f32 1.442695, %v376_v39 }
 0x290   :  { %446 = vpow2.f32 %v377_v40 }
 0x291   :  { %448 = vpow2.f32 %v379_v41 }
 0x29a   :  { %v447_v42 = vpop.eup %446 }
 0x29b   :  { %v449_v43 = vpop.eup %448  ;;  %v381_v44 = vrot.slane %v447_v42, 4 }
 0x29c   :  { %v387_v45 = vrot.slane %v449_v43, 4 }
 0x29d   :  { %v382_v46 = vadd.f32 %v447_v42, %v381_v44 }
 0x29e   :  { %v388_v47 = vadd.f32 %v449_v43, %v387_v45 }
 0x29f   :  { %v383_v48 = vrot.slane %v382_v46, 2 }
 0x2a0   :  { %v389_v49 = vrot.slane %v388_v47, 2 }
 0x2a1   :  { %v384_v50 = vadd.f32 %v383_v48, %v382_v46 }
 0x2a2   :  { %v390_v51 = vadd.f32 %v389_v49, %v388_v47 }
 0x2a3   :  { %v385_v52 = vrot.slane %v384_v50, 1 }
 0x2a4   :  { %v391_v53 = vrot.slane %v390_v51, 1 }
 0x2a5   :  { %v386_v54 = vadd.f32 %v385_v52, %v384_v50 }
 0x2a6   :  { %v392_v55 = vadd.f32 %v391_v53, %v390_v51 }
 0x2a7   :  { %450 = vrcp.f32 %v386_v54 }
 0x2a8   :  { %452 = vrcp.f32 %v392_v55 }
 0x2b1   :  { %v451_v56 = vpop.eup %450 }
 0x2b2   :  { %v453_v57 = vpop.eup %452  ;;  %v395_v58 = vmul.f32 %v451_v56, %v447_v42 }
 0x2b3   :  { %v396_v59 = vmul.f32 %v453_v57, %v449_v43 }
 0x2b4   :  { %397 = vst [vmem:[%s605_s5] sm:$0xff] %v395_v58 }
 0x2b5   :  { %398 = vst [vmem:[%s605_s5 + $0x8] sm:$0xff] %v396_v59 }
 0x2b6   :  { %403 = vsyncpa [#allocation3], 1 }
 0x2b7   :  { %404 = vsyncpa [#allocation5], 1 }

</bundles_post_ra>
